<compile_context>
chip_gen: v5e
topology: v5e:2x2
jax: 0.10.0
libtpu: 0.0.40
codegen_flags: <defaults>
</compile_context>

<pallas_src>
import jax
import jax.numpy as jnp
from jax.experimental import pallas as pl
from jax.experimental.pallas import tpu as pltpu


# Preferred batch tile: multiple of 256 (fills v6e/v7x 256-wide MXU height,
# and is also a multiple of the 128-row v5e MXU tile).
PREFERRED_TILE_B = 256


def _round_up(x, m):
    return ((x + m - 1) // m) * m


def _choose_tile_b(batch):
    padded = _round_up(batch, 8)          # (8, 128) sublane constraint
    return padded if padded <= PREFERRED_TILE_B else PREFERRED_TILE_B


def sacq_kernel(x_ref, wbd_ref, b12_ref, wq_ref, bq_ref, wqq_ref, bqq_ref,
                out_ref):
    # z = relu([frame|action] @ blockdiag(W1, W2) + [b1|b2])   -> (tile_b, 2H)
    z = jnp.dot(x_ref[...], wbd_ref[...], preferred_element_type=jnp.float32)
    z = jnp.maximum(z + b12_ref[...], 0.0)

    # q = relu(z @ Wq + bq)                                    -> (tile_b, H)
    q = jnp.dot(z, wq_ref[...], preferred_element_type=jnp.float32)
    q = jnp.maximum(q + bq_ref[...], 0.0)

    # out = q . wqq_row + bqq  -- VPU multiply + XLU lane reduce instead of a
    # 1-column MXU matmul; bqq is a scalar read from SMEM.
    out = jnp.sum(q * wqq_ref[...], axis=-1, keepdims=True) + bqq_ref[0, 0]
    out_ref[...] = out.astype(out_ref.dtype)


def sacq_forward(frame, action, params):
    (wbd, b12, wq, bq, wqq_row, bqq) = params
    B = frame.shape[0]

    # Fused input for the block-diagonal first layer.
    x = jnp.concatenate([frame, action], axis=1)           # (B, n_in)
    n_in = x.shape[1]
    h2 = wbd.shape[1]                                       # 2 * n_hidden
    h = wq.shape[1]                                         # n_hidden

    tile_b = _choose_tile_b(B)
    Bp = _round_up(B, tile_b)
    if Bp != B:
        x = jnp.pad(x, ((0, Bp - B), (0, 0)))
    grid = (Bp // tile_b,)

    out = pl.pallas_call(
        sacq_kernel,
        out_shape=jax.ShapeDtypeStruct((Bp, 1), jnp.float32),
        grid=grid,
        in_specs=[
            # Batch-tiled activation input.
            pl.BlockSpec((tile_b, n_in), lambda i: (i, 0)),
            # Weights / biases: constant block index -> VMEM-resident.
            pl.BlockSpec((n_in, h2), lambda i: (0, 0)),
            pl.BlockSpec((1, h2), lambda i: (0, 0)),
            pl.BlockSpec((h2, h), lambda i: (0, 0)),
            pl.BlockSpec((1, h), lambda i: (0, 0)),
            pl.BlockSpec((1, h), lambda i: (0, 0)),
            # Scalar output bias lives in SMEM (no padded VMEM tile).
            pl.BlockSpec(memory_space=pltpu.MemorySpace.SMEM),
        ],
        out_specs=pl.BlockSpec((tile_b, 1), lambda i: (i, 0)),
        compiler_params=pltpu.CompilerParams(
            dimension_semantics=("parallel",)),
    )(x, wbd, b12, wq, bq, wqq_row, bqq)

    return out[:B]


def init_params(key, n_observations, action_dim, n_hidden):
    """Deterministic PyTorch-style (uniform +/- 1/sqrt(fan_in)) init.

    Returns fused / pre-transposed parameters:
      wbd     : (n_obs + action_dim, 2*n_hidden)  block-diag of W1, W2
      b12     : (1, 2*n_hidden)                   [b1 | b2]
      wq      : (2*n_hidden, n_hidden)            concat-layer weight (transposed)
      bq      : (1, n_hidden)
      wqq_row : (1, n_hidden)                     final-layer weight as a row
      bqq     : (1, 1)                            final-layer bias (SMEM scalar)
    """
    def linear(key, fan_in, fan_out):
        kw, kb = jax.random.split(key)
        bound = 1.0 / (fan_in ** 0.5)
        w = jax.random.uniform(kw, (fan_in, fan_out), jnp.float32, -bound, bound)
        b = jax.random.uniform(kb, (1, fan_out), jnp.float32, -bound, bound)
        return w, b

    k1, k2, k3, k4 = jax.random.split(key, 4)
    w1, b1 = linear(k1, n_observations, n_hidden)           # self.linear
    w2, b2 = linear(k2, action_dim, n_hidden)               # self.linear_2
    wq, bq = linear(k3, 2 * n_hidden, n_hidden)             # self.linear_q
    wqq, bqq = linear(k4, n_hidden, 1)                      # self.linear_qq

    # Fuse layer 1 & 2 into one block-diagonal matmul:
    #   [frame|action] @ blockdiag(W1, W2) == [frame@W1 | action@W2]
    wbd = jnp.zeros((n_observations + action_dim, 2 * n_hidden), jnp.float32)
    wbd = wbd.at[:n_observations, :n_hidden].set(w1)
    wbd = wbd.at[n_observations:, n_hidden:].set(w2)
    b12 = jnp.concatenate([b1, b2], axis=1)                 # (1, 2*n_hidden)

    wqq_row = wqq.T                                          # (1, n_hidden)
    return (wbd, b12, wq, bq, wqq_row, bqq)


def sacq_reference(frame, action, params):
    """Pure-JAX reference for correctness checking (same math as PyTorch)."""
    (wbd, b12, wq, bq, wqq_row, bqq) = params
    x = jnp.concatenate([frame, action], axis=1)
    z = jnp.maximum(x @ wbd + b12, 0.0)        # == [relu(frame@W1+b1) | relu(action@W2+b2)]
    q = jnp.maximum(z @ wq + bq, 0.0)
    return q @ wqq_row.T + bqq


if __name__ == "__main__":
    key = jax.random.PRNGKey(0)
    k_params, k_frame, k_action = jax.random.split(key, 3)

    B = 8
    n_observations = 32
    action_dim = 8
    n_hidden = 32

    params = init_params(k_params, n_observations, action_dim, n_hidden)
    frame = jax.random.normal(k_frame, (B, n_observations), jnp.float32)
    action = jax.random.normal(k_action, (B, action_dim), jnp.float32)

    out = sacq_forward(frame, action, params)
    out = jax.block_until_ready(out)

    ref = sacq_reference(frame, action, params)
    assert out.shape == (B, 1), out.shape
    assert jnp.allclose(out, ref, atol=1e-5, rtol=1e-5), (out, ref)

    print("KERNEL_OK")
</pallas_src>

<mosaic_0001>
module attributes {stable_mosaic.version = 11 : i64} {
  func.func @sacq_kernel(%arg0: i32, %arg1: memref<8x40xf32, #tpu.memory_space<vmem>>, %arg2: memref<40x64xf32, #tpu.memory_space<vmem>>, %arg3: memref<1x64xf32, #tpu.memory_space<vmem>>, %arg4: memref<64x32xf32, #tpu.memory_space<vmem>>, %arg5: memref<1x32xf32, #tpu.memory_space<vmem>>, %arg6: memref<1x32xf32, #tpu.memory_space<vmem>>, %arg7: memref<1x1xf32, #tpu.memory_space<smem>>, %arg8: memref<8x1xf32, #tpu.memory_space<vmem>>) attributes {dimension_semantics = [#tpu.dimension_semantics<parallel>], iteration_bounds = array<i64: 1>, scalar_prefetch = 0 : i64, scratch_operands = 0 : i64, tpu.core_type = #tpu.core_type<tc>, window_params = [{transform_indices = @transform_0, window_bounds = array<i64: 8, 40>}, {pipeline_mode = #tpu.pipeline_mode<synchronous>, transform_indices = @transform_1, window_bounds = array<i64: 40, 64>}, {pipeline_mode = #tpu.pipeline_mode<synchronous>, transform_indices = @transform_2, window_bounds = array<i64: 1, 64>}, {pipeline_mode = #tpu.pipeline_mode<synchronous>, transform_indices = @transform_3, window_bounds = array<i64: 64, 32>}, {pipeline_mode = #tpu.pipeline_mode<synchronous>, transform_indices = @transform_4, window_bounds = array<i64: 1, 32>}, {pipeline_mode = #tpu.pipeline_mode<synchronous>, transform_indices = @transform_5, window_bounds = array<i64: 1, 32>}, {transform_indices = @transform_6, window_bounds = array<i64: 1, 1>}, {transform_indices = @transform_7, window_bounds = array<i64: 8, 1>}]} {
    %c0 = arith.constant 0 : index
    %c0_0 = arith.constant 0 : index
    %0 = vector.load %arg1[%c0, %c0_0] : memref<8x40xf32, #tpu.memory_space<vmem>>, vector<8x40xf32>
    %c0_1 = arith.constant 0 : index
    %c0_2 = arith.constant 0 : index
    %1 = vector.load %arg2[%c0_1, %c0_2] : memref<40x64xf32, #tpu.memory_space<vmem>>, vector<40x64xf32>
    %cst = arith.constant dense<0.000000e+00> : vector<8x64xf32>
    %2 = tpu.matmul %0, %1, %cst {dimension_numbers = #tpu.dot_dimension_numbers<[1], [0], [0], [1], [0, 0, 1, 1], [], []>} : vector<8x40xf32>, vector<40x64xf32>, vector<8x64xf32> -> vector<8x64xf32>
    %c0_3 = arith.constant 0 : index
    %c0_4 = arith.constant 0 : index
    %3 = vector.load %arg3[%c0_3, %c0_4] : memref<1x64xf32, #tpu.memory_space<vmem>>, vector<1x64xf32>
    %4 = vector.broadcast %3 : vector<1x64xf32> to vector<8x64xf32>
    %5 = arith.addf %2, %4 : vector<8x64xf32>
    %cst_5 = arith.constant 0.000000e+00 : f32
    %6 = vector.broadcast %cst_5 : f32 to vector<8x64xf32>
    %7 = arith.maximumf %5, %6 : vector<8x64xf32>
    %c0_6 = arith.constant 0 : index
    %c0_7 = arith.constant 0 : index
    %8 = vector.load %arg4[%c0_6, %c0_7] : memref<64x32xf32, #tpu.memory_space<vmem>>, vector<64x32xf32>
    %cst_8 = arith.constant dense<0.000000e+00> : vector<8x32xf32>
    %9 = tpu.matmul %7, %8, %cst_8 {dimension_numbers = #tpu.dot_dimension_numbers<[1], [0], [0], [1], [0, 0, 1, 1], [], []>} : vector<8x64xf32>, vector<64x32xf32>, vector<8x32xf32> -> vector<8x32xf32>
    %c0_9 = arith.constant 0 : index
    %c0_10 = arith.constant 0 : index
    %10 = vector.load %arg5[%c0_9, %c0_10] : memref<1x32xf32, #tpu.memory_space<vmem>>, vector<1x32xf32>
    %11 = vector.broadcast %10 : vector<1x32xf32> to vector<8x32xf32>
    %12 = arith.addf %9, %11 : vector<8x32xf32>
    %cst_11 = arith.constant 0.000000e+00 : f32
    %13 = vector.broadcast %cst_11 : f32 to vector<8x32xf32>
    %14 = arith.maximumf %12, %13 : vector<8x32xf32>
    %c0_12 = arith.constant 0 : index
    %c0_13 = arith.constant 0 : index
    %15 = vector.load %arg6[%c0_12, %c0_13] : memref<1x32xf32, #tpu.memory_space<vmem>>, vector<1x32xf32>
    %16 = vector.broadcast %15 : vector<1x32xf32> to vector<8x32xf32>
    %17 = arith.mulf %14, %16 : vector<8x32xf32>
    %cst_14 = arith.constant dense<0.000000e+00> : vector<8xf32>
    %18 = vector.multi_reduction <add>, %17, %cst_14 [1] : vector<8x32xf32> to vector<8xf32>
    %19 = vector.shape_cast %18 : vector<8xf32> to vector<8x1xf32>
    %c0_15 = arith.constant 0 : index
    %c0_16 = arith.constant 0 : index
    %20 = memref.load %arg7[%c0_15, %c0_16] : memref<1x1xf32, #tpu.memory_space<smem>>
    %21 = vector.broadcast %20 : f32 to vector<8x1xf32>
    %22 = arith.addf %19, %21 : vector<8x1xf32>
    %c0_17 = arith.constant 0 : index
    %c0_18 = arith.constant 0 : index
    %23 = vector.load %arg8[%c0_17, %c0_18] : memref<8x1xf32, #tpu.memory_space<vmem>>, vector<8x1xf32>
    tpu.vector_store %arg8[%c0_17, %c0_18], %22 {strides = array<i32>} : memref<8x1xf32, #tpu.memory_space<vmem>>, vector<8x1xf32>,
    return
  }
  func.func @transform_0(%arg0: i32) -> (i32, i32) {
    %c0_i32 = arith.constant 0 : i32
    %c0_i32_0 = arith.constant 0 : i32
    return %arg0, %c0_i32 : i32, i32
  }
  func.func @transform_1(%arg0: i32) -> (i32, i32) {
    %c0_i32 = arith.constant 0 : i32
    %c0_i32_0 = arith.constant 0 : i32
    %c0_i32_1 = arith.constant 0 : i32
    return %c0_i32, %c0_i32_0 : i32, i32
  }
  func.func @transform_2(%arg0: i32) -> (i32, i32) {
    %c0_i32 = arith.constant 0 : i32
    %c0_i32_0 = arith.constant 0 : i32
    %c0_i32_1 = arith.constant 0 : i32
    return %c0_i32, %c0_i32_0 : i32, i32
  }
  func.func @transform_3(%arg0: i32) -> (i32, i32) {
    %c0_i32 = arith.constant 0 : i32
    %c0_i32_0 = arith.constant 0 : i32
    %c0_i32_1 = arith.constant 0 : i32
    return %c0_i32, %c0_i32_0 : i32, i32
  }
  func.func @transform_4(%arg0: i32) -> (i32, i32) {
    %c0_i32 = arith.constant 0 : i32
    %c0_i32_0 = arith.constant 0 : i32
    %c0_i32_1 = arith.constant 0 : i32
    return %c0_i32, %c0_i32_0 : i32, i32
  }
  func.func @transform_5(%arg0: i32) -> (i32, i32) {
    %c0_i32 = arith.constant 0 : i32
    %c0_i32_0 = arith.constant 0 : i32
    %c0_i32_1 = arith.constant 0 : i32
    return %c0_i32, %c0_i32_0 : i32, i32
  }
  func.func @transform_6(%arg0: i32) -> (i32, i32) {
    %c0_i32 = arith.constant 0 : i32
    %c0_i32_0 = arith.constant 0 : i32
    %c0_i32_1 = arith.constant 0 : i32
    return %c0_i32, %c0_i32_0 : i32, i32
  }
  func.func @transform_7(%arg0: i32) -> (i32, i32) {
    %c0_i32 = arith.constant 0 : i32
    %c0_i32_0 = arith.constant 0 : i32
    return %arg0, %c0_i32 : i32, i32
  }
}

</mosaic_0001>

<bundles_post_ra>
// kernel: tpu_custom_call.1
= control target key start
LH: loop header
LB: loop body
LE: loop exit
PB: predicated region body
PF: predicated region fallthrough
CT: control target
= control target key end

     0   :  { %vm37_vm0 = vcmask 326656   ;;  %vm74_vm1 = vcmask 523264   ;;  %vm104_vm2 = vcmask 261120   ;;  %vm111_vm3 = vcmask 7168   ;;  %s219_s1 = inlined_call_operand.vmem [shape: f32[40,64], index: 1, kind: input, shape index: {}]   ;;  %s220_s3 = inlined_call_operand.vmem [shape: f32[64,32], index: 3, kind: input, shape index: {}]   ;;  %s221_s2 = inlined_call_operand.vmem [shape: f32[1,64], index: 2, kind: input, shape index: {}]   ;;  %s222_s0 = inlined_call_operand.vmem [shape: f32[8,40], index: 0, kind: input, shape index: {}]   ;;  %s223_s4 = inlined_call_operand.vmem [shape: f32[1,32], index: 4, kind: input, shape index: {}]   ;;  %s224_s5 = inlined_call_operand.vmem [shape: f32[1,32], index: 5, kind: input, shape index: {}]   ;;  %s225_s6 = inlined_call_operand.<no memory space> [shape: f32[1,1], index: 6, kind: input, shape index: {}]   ;;  %s226_s7 = inlined_call_operand.vmem [shape: f32[8,1], index: 7, kind: output, shape index: {}]  }
   0x1   :  { %v32_v0 = vld [vmem:[%s219_s1 + $0x20] sm:$0xff]  ;;  %v31_v1 = vld [vmem:[%s219_s1 + $0x18] sm:$0xff]  ;;  %v30_v2 = vld [vmem:[%s219_s1 + $0x10] sm:$0xff]  ;;  %v109_v25 = vstv %s225_s6 }
   0x2   :  { %52 = vmatpush.msra.mxu0 %v32_v0  ;;  %v69_v3 = vld [vmem:[%s220_s3 + $0x38] sm:$0xff]  ;;  %v68_v4 = vld [vmem:[%s220_s3 + $0x30] sm:$0xff]  ;;  %v29_v5 = vld [vmem:[%s219_s1 + $0x8] sm:$0xff] }
   0x3   :  { %86 = vmatpush.msra.mxu1 %v69_v3  ;;  %v67_v6 = vld [vmem:[%s220_s3 + $0x28] sm:$0xff]  ;;  %v28_v7 = vld [vmem:[%s219_s1] sm:$0xff]  ;;  %v65_v10 = vld [vmem:[%s220_s3 + $0x18] sm:$0xff] }
   0x4   :  { %53 = vmatpush.msra.mxu0 %v31_v1  ;;  %v66_v8 = vld [vmem:[%s220_s3 + $0x20] sm:$0xff]  ;;  %v64_v11 = vld [vmem:[%s220_s3 + $0x10] sm:$0xff]  ;;  %v63_v12 = vld [vmem:[%s220_s3 + $0x8] sm:$0xff] }
   0x5   :  { %87 = vmatpush.msra.mxu1 %v68_v4  ;;  %v27_v9 = vld [vmem:[%s222_s0] sm:$0xff] }
   0x6   :  { %54 = vmatpush.msra.mxu0 %v30_v2  ;;  %v62_v13 = vld [vmem:[%s220_s3] sm:$0xff] }
   0x7   :  { %88 = vmatpush.msra.mxu1 %v67_v6  ;;  %v119_v14 = vld [vmem:[%s221_s2] ss:$0 sm:$0xff] }
   0x8   :  { %55 = vmatpush.msra.mxu0 %v29_v5  ;;  %v120_v18 = vld [vmem:[%s223_s4] ss:$0 sm:$0xff] }
   0x9   :  { %89 = vmatpush.msra.mxu1 %v66_v8  ;;  %v121_v21 = vld [vmem:[%s224_s5] ss:$0 sm:$0xff] }
   0xa   :  { %56 = vmatpush.msra.mxu0 %v28_v7 }
   0xb   :  { %117 = vmatmul.msk.f32.vlgmr.msra.gmra.mxu0 %vm37_vm0, %v27_v9  ;;  %90 = vmatpush.msra.mxu1 %v65_v10 }
   0xd   :  { %91 = vmatpush.msra.mxu1 %v64_v11 }
   0xf   :  { %92 = vmatpush.msra.mxu1 %v63_v12 }
  0x11   :  { %93 = vmatpush.msra.mxu1 %v62_v13 }
  0x88   :  { %v58_v15 = vpop.f32.mrf.mxu0 }
  0x89   :  { %v59_v16 = vadd.f32 %v119_v14, %v58_v15 }
  0x8b   :  { %v61_v17 = vmax.f32 %v59_v16, 0.0 }
  0x8d   :  { %118 = vmatmul.msk.f32.vlgmr.msra.gmra.mxu1 %vm74_vm1, %v61_v17 }
 0x10a   :  { %v95_v19 = vpop.f32.mrf.mxu1 }
 0x10b   :  { %v96_v20 = vadd.f32 %v120_v18, %v95_v19 }
 0x10d   :  { %v98_v22 = vmax.f32 %v96_v20, 0.0 }
 0x10f   :  { %v103_v23 = vmul.f32 %v121_v21, %v98_v22 }
 0x111   :  { %v105_v24 = vsel %vm104_vm2, %v103_v23, 0.0 }
 0x112   :  { %106 = vadd.xlane.f32.xlu0 %v105_v24 }
 0x185   :  { %v107_v26 = vpop.xlane.xlu0 %106 }
 0x186   :  { %v110_v27 = vadd.f32 %v109_v25, %v107_v26 }
 0x188   :  { %112 = vst.msk [vmem:[%s226_s7] sm:$0xff] %vm111_vm3, %v110_v27 }

</bundles_post_ra>
